<compile_context>
chip_gen: v7x
topology: tpu7x:2x2x1
jax: 0.10.0
libtpu: 0.0.40
codegen_flags: <defaults>
</compile_context>

<pallas_src>
import functools
import math

import jax
import jax.numpy as jnp
from jax import lax
from jax.experimental import pallas as pl
from jax.experimental.pallas import tpu as pltpu

_INV_SQRT2 = 0.7071067811865476


# ----------------------------- fused kernel -----------------------------------


def _rgcn_fused_kernel(xt_ref, wt_ref, adj_ref, out_ref, *, n_head, o_size, n_layers):
    # xt_ref:  (1, d, n_node)          feature-major input activation
    # wt_ref:  (n_layers, H*o, d)      pre-transposed per-layer projection weights
    # adj_ref: (1, n_head, n_node, n_node)  un-normalized adjacency, adj[h, i, j] = edge i->j
    # out_ref: (1, o, n_node)          feature-major output
    adj = adj_ref[0]                                       # (H, n_src, n_dst)
    n_node = adj.shape[1]

    # Inverse in-degree per head: 1 / max(sum_i adj[h, i, j], 1).  Computed ONCE per
    # batch element (amortized over all layers), kept as (1, n_dst) lane vectors so it
    # broadcasts over the o sublanes of the aggregation for free.  No normalized
    # adjacency copy is ever materialized.
    inv_deg = []
    for hd in range(n_head):
        deg = jnp.sum(adj[hd], axis=0, keepdims=True)      # (1, n_dst)
        inv_deg.append(pl.reciprocal(jnp.maximum(deg, 1.0), approx=True))

    h_t = xt_ref[0]                                        # (d, n) activation, stays on-chip

    for l in range(n_layers):                              # static unroll over layers
        # Single lane/sublane-dense projection: (H*o, d) @ (d, n) -> (H*o, n).
        proj_t = jnp.dot(wt_ref[l], h_t, preferred_element_type=jnp.float32)

        acc_t = jnp.zeros((o_size, n_node), jnp.float32)
        for hd in range(n_head):                           # static unroll over heads
            # Sublane-aligned head slice of the projection.
            p_h = proj_t[hd * o_size:(hd + 1) * o_size, :]          # (o, n_src)
            # Canonical MXU dot, adjacency used untransposed.
            agg = jnp.dot(p_h, adj[hd],
                          preferred_element_type=jnp.float32)       # (o, n_dst)
            # Post-matmul 1/deg scaling (broadcast over sublanes) + head accumulation.
            acc_t = acc_t + inv_deg[hd] * agg

        # exact GELU (torch nn.GELU default, erf-based); o == d so this feeds next layer.
        h_t = 0.5 * acc_t * (1.0 + lax.erf(acc_t * _INV_SQRT2))

    out_ref[0] = h_t.astype(out_ref.dtype)                 # (o, n)


# ----------------------------- wrapper -----------------------------------------


def rgcn_forward(x, adj, w_stack):
    """Full RGCN forward (eval mode) in one pallas_call.

    x:       (bs, n_node, d) float32
    adj:     (bs, n_head, n_node, n_node) float32 (self loops already added)
    w_stack: (n_layers, n_head, d, o) float32
    returns: (bs, n_node, o) float32
    """
    bs, n_node, d = x.shape
    n_layers, n_head, _, o_size = w_stack.shape

    # Layout plumbing on the SMALL tensors only (the dominant adjacency tensor is passed
    # as-is — no swapaxes of adj anywhere):
    #   x  -> feature-major (bs, d, n)
    #   w  -> (L, H*o, d) with row index h*o + o' = w_stack[l, h, :, o']
    x_t = jnp.swapaxes(x, 1, 2)
    w_t = jnp.transpose(w_stack, (0, 1, 3, 2)).reshape(n_layers, n_head * o_size, d)

    kernel = functools.partial(
        _rgcn_fused_kernel, n_head=n_head, o_size=o_size, n_layers=n_layers)

    # Explicit VMEM budget: 2x (double buffering) the resident blocks + headroom.
    block_bytes = 4 * (d * n_node
                       + n_layers * n_head * o_size * d
                       + n_head * n_node * n_node
                       + o_size * n_node)
    vmem_limit = int(min(128 * 1024 * 1024, 2 * block_bytes + (16 << 20)))

    out_t = pl.pallas_call(
        kernel,
        out_shape=jax.ShapeDtypeStruct((bs, o_size, n_node), x.dtype),
        grid=(bs,),
        in_specs=[
            pl.BlockSpec((1, d, n_node), lambda b: (b, 0, 0)),
            pl.BlockSpec((n_layers, n_head * o_size, d), lambda b: (0, 0, 0)),
            pl.BlockSpec((1, n_head, n_node, n_node), lambda b: (b, 0, 0, 0)),
        ],
        out_specs=pl.BlockSpec((1, o_size, n_node), lambda b: (b, 0, 0)),
        compiler_params=pltpu.CompilerParams(
            dimension_semantics=("parallel",),
            vmem_limit_bytes=vmem_limit),
    )(x_t, w_t, adj)

    return jnp.swapaxes(out_t, 1, 2)                       # (bs, n, o)


# ----------------------------- parameter setup (glue) --------------------------


def init_effective_weight(key, input_size, n_head, n_basis, diag_decompose):
    """Build the effective per-head dense weight, shape (n_head, d, o)."""
    o = input_size
    std = math.sqrt(2.0 / (input_size + o))
    k1, k2 = jax.random.split(key)
    if diag_decompose:
        w_vs = std * jax.random.normal(k1, (input_size, n_head), jnp.float32)
        w_full = jnp.eye(input_size, dtype=jnp.float32)[:, :, None] * w_vs[:, None, :]
    elif n_basis == 0:
        w_vs = std * jax.random.normal(k1, (input_size, o * n_head), jnp.float32)
        w_full = w_vs.reshape(input_size, o, n_head)
    else:
        w_vs = std * jax.random.normal(k1, (input_size, o, n_basis), jnp.float32)
        bound = math.sqrt(6.0 / (n_basis + n_head))
        w_vs_co = jax.random.uniform(k2, (n_basis, n_head), jnp.float32, -bound, bound)
        w_full = jnp.einsum("dob,bh->doh", w_vs, w_vs_co)
    # (d, o, H) -> (H, d, o)
    return jnp.transpose(w_full, (2, 0, 1))


# ----------------------------- pure-JAX reference ------------------------------


def reference_forward(x, adj, w_stack):
    in_deg = jnp.maximum(adj.sum(axis=2), 1.0)                       # (bs, H, n)
    norm_adj_t = jnp.swapaxes(adj, 2, 3) / in_deg[..., None]
    out = x
    for l in range(w_stack.shape[0]):
        proj = jnp.einsum("bnd,hdo->bhno", out, w_stack[l])
        agg = jnp.einsum("bhji,bhio->bjo", norm_adj_t, proj)
        out = 0.5 * agg * (1.0 + jax.scipy.special.erf(agg * _INV_SQRT2))
    return out


# ----------------------------- main --------------------------------------------

if __name__ == "__main__":
    # RGCN(input_size=32, num_heads=4, num_basis=0, num_layers=1, dropout=0.1,
    #      diag_decompose=False)  ->  num_layers + 1 = 2 RGCNLayers
    bs, n_node, d = 2, 16, 32
    n_head, n_basis, num_layers = 4, 0, 1
    diag_decompose = False

    key = jax.random.PRNGKey(0)
    k_x, k_adj, k_w = jax.random.split(key, 3)

    x = jax.random.normal(k_x, (bs, n_node, d), jnp.float32)
    adj = (jax.random.uniform(k_adj, (bs, n_head, n_node, n_node)) < 0.3).astype(jnp.float32)
    adj = jnp.maximum(adj, jnp.eye(n_node, dtype=jnp.float32))  # self loops already added

    wkeys = jax.random.split(k_w, num_layers + 1)
    w_stack = jnp.stack(
        [init_effective_weight(wk, d, n_head, n_basis, diag_decompose) for wk in wkeys],
        axis=0)                                                     # (L, H, d, o)

    out = rgcn_forward(x, adj, w_stack)
    out = jax.block_until_ready(out)

    ref = reference_forward(x, adj, w_stack)
    assert out.shape == (bs, n_node, d), out.shape
    assert jnp.allclose(out, ref, atol=2e-3, rtol=2e-3), float(jnp.max(jnp.abs(out - ref)))

    print("KERNEL_OK")
</pallas_src>

<mosaic_0001>
module attributes {stable_mosaic.version = 11 : i64} {
  func.func @_rgcn_fused_kernel(%arg0: i32, %arg1: memref<1x32x16xf32, #tpu.memory_space<vmem>>, %arg2: memref<2x128x32xf32, #tpu.memory_space<vmem>>, %arg3: memref<1x4x16x16xf32, #tpu.memory_space<vmem>>, %arg4: memref<1x32x16xf32, #tpu.memory_space<vmem>>) attributes {dimension_semantics = [#tpu.dimension_semantics<parallel>], iteration_bounds = array<i64: 2>, scalar_prefetch = 0 : i64, scratch_operands = 0 : i64, tpu.core_type = #tpu.core_type<tc>, window_params = [{transform_indices = @transform_0, window_bounds = array<i64: 1, 32, 16>}, {pipeline_mode = #tpu.pipeline_mode<synchronous>, transform_indices = @transform_1, window_bounds = array<i64: 2, 128, 32>}, {transform_indices = @transform_2, window_bounds = array<i64: 1, 4, 16, 16>}, {transform_indices = @transform_3, window_bounds = array<i64: 1, 32, 16>}]} {
    %c0 = arith.constant 0 : index
    %c0_0 = arith.constant 0 : index
    %c0_1 = arith.constant 0 : index
    %c0_2 = arith.constant 0 : index
    %0 = vector.load %arg3[%c0, %c0_0, %c0_1, %c0_2] : memref<1x4x16x16xf32, #tpu.memory_space<vmem>>, vector<1x4x16x16xf32>
    %1 = vector.shape_cast %0 : vector<1x4x16x16xf32> to vector<4x16x16xf32>
    %2 = vector.extract_strided_slice %1 {offsets = [0, 0, 0], sizes = [1, 16, 16], strides = [1, 1, 1]} : vector<4x16x16xf32> to vector<1x16x16xf32>
    %3 = vector.shape_cast %2 : vector<1x16x16xf32> to vector<16x16xf32>
    %cst = arith.constant dense<0.000000e+00> : vector<16xf32>
    %4 = vector.multi_reduction <add>, %3, %cst [0] : vector<16x16xf32> to vector<16xf32>
    %5 = vector.shape_cast %4 : vector<16xf32> to vector<1x16xf32>
    %cst_3 = arith.constant 1.000000e+00 : f32
    %6 = vector.broadcast %cst_3 : f32 to vector<1x16xf32>
    %7 = arith.maximumf %5, %6 : vector<1x16xf32>
    %8 = tpu.reciprocal %7 {approx = true} : vector<1x16xf32> -> vector<1x16xf32>
    %9 = vector.extract_strided_slice %1 {offsets = [1, 0, 0], sizes = [1, 16, 16], strides = [1, 1, 1]} : vector<4x16x16xf32> to vector<1x16x16xf32>
    %10 = vector.shape_cast %9 : vector<1x16x16xf32> to vector<16x16xf32>
    %cst_4 = arith.constant dense<0.000000e+00> : vector<16xf32>
    %11 = vector.multi_reduction <add>, %10, %cst_4 [0] : vector<16x16xf32> to vector<16xf32>
    %12 = vector.shape_cast %11 : vector<16xf32> to vector<1x16xf32>
    %cst_5 = arith.constant 1.000000e+00 : f32
    %13 = vector.broadcast %cst_5 : f32 to vector<1x16xf32>
    %14 = arith.maximumf %12, %13 : vector<1x16xf32>
    %15 = tpu.reciprocal %14 {approx = true} : vector<1x16xf32> -> vector<1x16xf32>
    %16 = vector.extract_strided_slice %1 {offsets = [2, 0, 0], sizes = [1, 16, 16], strides = [1, 1, 1]} : vector<4x16x16xf32> to vector<1x16x16xf32>
    %17 = vector.shape_cast %16 : vector<1x16x16xf32> to vector<16x16xf32>
    %cst_6 = arith.constant dense<0.000000e+00> : vector<16xf32>
    %18 = vector.multi_reduction <add>, %17, %cst_6 [0] : vector<16x16xf32> to vector<16xf32>
    %19 = vector.shape_cast %18 : vector<16xf32> to vector<1x16xf32>
    %cst_7 = arith.constant 1.000000e+00 : f32
    %20 = vector.broadcast %cst_7 : f32 to vector<1x16xf32>
    %21 = arith.maximumf %19, %20 : vector<1x16xf32>
    %22 = tpu.reciprocal %21 {approx = true} : vector<1x16xf32> -> vector<1x16xf32>
    %23 = vector.extract_strided_slice %1 {offsets = [3, 0, 0], sizes = [1, 16, 16], strides = [1, 1, 1]} : vector<4x16x16xf32> to vector<1x16x16xf32>
    %24 = vector.shape_cast %23 : vector<1x16x16xf32> to vector<16x16xf32>
    %cst_8 = arith.constant dense<0.000000e+00> : vector<16xf32>
    %25 = vector.multi_reduction <add>, %24, %cst_8 [0] : vector<16x16xf32> to vector<16xf32>
    %26 = vector.shape_cast %25 : vector<16xf32> to vector<1x16xf32>
    %cst_9 = arith.constant 1.000000e+00 : f32
    %27 = vector.broadcast %cst_9 : f32 to vector<1x16xf32>
    %28 = arith.maximumf %26, %27 : vector<1x16xf32>
    %29 = tpu.reciprocal %28 {approx = true} : vector<1x16xf32> -> vector<1x16xf32>
    %c0_10 = arith.constant 0 : index
    %c0_11 = arith.constant 0 : index
    %c0_12 = arith.constant 0 : index
    %30 = vector.load %arg1[%c0_10, %c0_11, %c0_12] : memref<1x32x16xf32, #tpu.memory_space<vmem>>, vector<1x32x16xf32>
    %31 = vector.shape_cast %30 : vector<1x32x16xf32> to vector<32x16xf32>
    %c0_13 = arith.constant 0 : index
    %c0_14 = arith.constant 0 : index
    %c0_15 = arith.constant 0 : index
    %32 = vector.load %arg2[%c0_13, %c0_14, %c0_15] : memref<2x128x32xf32, #tpu.memory_space<vmem>>, vector<1x128x32xf32>
    %33 = vector.shape_cast %32 : vector<1x128x32xf32> to vector<128x32xf32>
    %cst_16 = arith.constant dense<0.000000e+00> : vector<128x16xf32>
    %34 = tpu.matmul %33, %31, %cst_16 {dimension_numbers = #tpu.dot_dimension_numbers<[1], [0], [0], [1], [0, 0, 1, 1], [], []>} : vector<128x32xf32>, vector<32x16xf32>, vector<128x16xf32> -> vector<128x16xf32>
    %cst_17 = arith.constant 0.000000e+00 : f32
    %35 = vector.broadcast %cst_17 : f32 to vector<32x16xf32>
    %36 = vector.extract_strided_slice %34 {offsets = [0, 0], sizes = [32, 16], strides = [1, 1]} : vector<128x16xf32> to vector<32x16xf32>
    %37 = vector.extract_strided_slice %1 {offsets = [0, 0, 0], sizes = [1, 16, 16], strides = [1, 1, 1]} : vector<4x16x16xf32> to vector<1x16x16xf32>
    %38 = vector.shape_cast %37 : vector<1x16x16xf32> to vector<16x16xf32>
    %cst_18 = arith.constant dense<0.000000e+00> : vector<32x16xf32>
    %39 = tpu.matmul %36, %38, %cst_18 {dimension_numbers = #tpu.dot_dimension_numbers<[1], [0], [0], [1], [0, 0, 1, 1], [], []>} : vector<32x16xf32>, vector<16x16xf32>, vector<32x16xf32> -> vector<32x16xf32>
    %40 = vector.broadcast %8 : vector<1x16xf32> to vector<32x16xf32>
    %41 = arith.mulf %40, %39 : vector<32x16xf32>
    %42 = arith.addf %35, %41 : vector<32x16xf32>
    %43 = vector.extract_strided_slice %34 {offsets = [32, 0], sizes = [32, 16], strides = [1, 1]} : vector<128x16xf32> to vector<32x16xf32>
    %44 = vector.extract_strided_slice %1 {offsets = [1, 0, 0], sizes = [1, 16, 16], strides = [1, 1, 1]} : vector<4x16x16xf32> to vector<1x16x16xf32>
    %45 = vector.shape_cast %44 : vector<1x16x16xf32> to vector<16x16xf32>
    %cst_19 = arith.constant dense<0.000000e+00> : vector<32x16xf32>
    %46 = tpu.matmul %43, %45, %cst_19 {dimension_numbers = #tpu.dot_dimension_numbers<[1], [0], [0], [1], [0, 0, 1, 1], [], []>} : vector<32x16xf32>, vector<16x16xf32>, vector<32x16xf32> -> vector<32x16xf32>
    %47 = vector.broadcast %15 : vector<1x16xf32> to vector<32x16xf32>
    %48 = arith.mulf %47, %46 : vector<32x16xf32>
    %49 = arith.addf %42, %48 : vector<32x16xf32>
    %50 = vector.extract_strided_slice %34 {offsets = [64, 0], sizes = [32, 16], strides = [1, 1]} : vector<128x16xf32> to vector<32x16xf32>
    %51 = vector.extract_strided_slice %1 {offsets = [2, 0, 0], sizes = [1, 16, 16], strides = [1, 1, 1]} : vector<4x16x16xf32> to vector<1x16x16xf32>
    %52 = vector.shape_cast %51 : vector<1x16x16xf32> to vector<16x16xf32>
    %cst_20 = arith.constant dense<0.000000e+00> : vector<32x16xf32>
    %53 = tpu.matmul %50, %52, %cst_20 {dimension_numbers = #tpu.dot_dimension_numbers<[1], [0], [0], [1], [0, 0, 1, 1], [], []>} : vector<32x16xf32>, vector<16x16xf32>, vector<32x16xf32> -> vector<32x16xf32>
    %54 = vector.broadcast %22 : vector<1x16xf32> to vector<32x16xf32>
    %55 = arith.mulf %54, %53 : vector<32x16xf32>
    %56 = arith.addf %49, %55 : vector<32x16xf32>
    %57 = vector.extract_strided_slice %34 {offsets = [96, 0], sizes = [32, 16], strides = [1, 1]} : vector<128x16xf32> to vector<32x16xf32>
    %58 = vector.extract_strided_slice %1 {offsets = [3, 0, 0], sizes = [1, 16, 16], strides = [1, 1, 1]} : vector<4x16x16xf32> to vector<1x16x16xf32>
    %59 = vector.shape_cast %58 : vector<1x16x16xf32> to vector<16x16xf32>
    %cst_21 = arith.constant dense<0.000000e+00> : vector<32x16xf32>
    %60 = tpu.matmul %57, %59, %cst_21 {dimension_numbers = #tpu.dot_dimension_numbers<[1], [0], [0], [1], [0, 0, 1, 1], [], []>} : vector<32x16xf32>, vector<16x16xf32>, vector<32x16xf32> -> vector<32x16xf32>
    %61 = vector.broadcast %29 : vector<1x16xf32> to vector<32x16xf32>
    %62 = arith.mulf %61, %60 : vector<32x16xf32>
    %63 = arith.addf %56, %62 : vector<32x16xf32>
    %cst_22 = arith.constant 5.000000e-01 : f32
    %64 = vector.broadcast %cst_22 : f32 to vector<32x16xf32>
    %65 = arith.mulf %64, %63 : vector<32x16xf32>
    %cst_23 = arith.constant 0.707106769 : f32
    %66 = vector.broadcast %cst_23 : f32 to vector<32x16xf32>
    %67 = arith.mulf %63, %66 : vector<32x16xf32>
    %68 = math.erf %67 : vector<32x16xf32>
    %cst_24 = arith.constant 1.000000e+00 : f32
    %69 = vector.broadcast %cst_24 : f32 to vector<32x16xf32>
    %70 = arith.addf %69, %68 : vector<32x16xf32>
    %71 = arith.mulf %65, %70 : vector<32x16xf32>
    %c1 = arith.constant 1 : index
    %c0_25 = arith.constant 0 : index
    %c0_26 = arith.constant 0 : index
    %72 = vector.load %arg2[%c1, %c0_25, %c0_26] : memref<2x128x32xf32, #tpu.memory_space<vmem>>, vector<1x128x32xf32>
    %73 = vector.shape_cast %72 : vector<1x128x32xf32> to vector<128x32xf32>
    %cst_27 = arith.constant dense<0.000000e+00> : vector<128x16xf32>
    %74 = tpu.matmul %73, %71, %cst_27 {dimension_numbers = #tpu.dot_dimension_numbers<[1], [0], [0], [1], [0, 0, 1, 1], [], []>} : vector<128x32xf32>, vector<32x16xf32>, vector<128x16xf32> -> vector<128x16xf32>
    %cst_28 = arith.constant 0.000000e+00 : f32
    %75 = vector.broadcast %cst_28 : f32 to vector<32x16xf32>
    %76 = vector.extract_strided_slice %74 {offsets = [0, 0], sizes = [32, 16], strides = [1, 1]} : vector<128x16xf32> to vector<32x16xf32>
    %77 = vector.extract_strided_slice %1 {offsets = [0, 0, 0], sizes = [1, 16, 16], strides = [1, 1, 1]} : vector<4x16x16xf32> to vector<1x16x16xf32>
    %78 = vector.shape_cast %77 : vector<1x16x16xf32> to vector<16x16xf32>
    %cst_29 = arith.constant dense<0.000000e+00> : vector<32x16xf32>
    %79 = tpu.matmul %76, %78, %cst_29 {dimension_numbers = #tpu.dot_dimension_numbers<[1], [0], [0], [1], [0, 0, 1, 1], [], []>} : vector<32x16xf32>, vector<16x16xf32>, vector<32x16xf32> -> vector<32x16xf32>
    %80 = vector.broadcast %8 : vector<1x16xf32> to vector<32x16xf32>
    %81 = arith.mulf %80, %79 : vector<32x16xf32>
    %82 = arith.addf %75, %81 : vector<32x16xf32>
    %83 = vector.extract_strided_slice %74 {offsets = [32, 0], sizes = [32, 16], strides = [1, 1]} : vector<128x16xf32> to vector<32x16xf32>
    %84 = vector.extract_strided_slice %1 {offsets = [1, 0, 0], sizes = [1, 16, 16], strides = [1, 1, 1]} : vector<4x16x16xf32> to vector<1x16x16xf32>
    %85 = vector.shape_cast %84 : vector<1x16x16xf32> to vector<16x16xf32>
    %cst_30 = arith.constant dense<0.000000e+00> : vector<32x16xf32>
    %86 = tpu.matmul %83, %85, %cst_30 {dimension_numbers = #tpu.dot_dimension_numbers<[1], [0], [0], [1], [0, 0, 1, 1], [], []>} : vector<32x16xf32>, vector<16x16xf32>, vector<32x16xf32> -> vector<32x16xf32>
    %87 = vector.broadcast %15 : vector<1x16xf32> to vector<32x16xf32>
    %88 = arith.mulf %87, %86 : vector<32x16xf32>
    %89 = arith.addf %82, %88 : vector<32x16xf32>
    %90 = vector.extract_strided_slice %74 {offsets = [64, 0], sizes = [32, 16], strides = [1, 1]} : vector<128x16xf32> to vector<32x16xf32>
    %91 = vector.extract_strided_slice %1 {offsets = [2, 0, 0], sizes = [1, 16, 16], strides = [1, 1, 1]} : vector<4x16x16xf32> to vector<1x16x16xf32>
    %92 = vector.shape_cast %91 : vector<1x16x16xf32> to vector<16x16xf32>
    %cst_31 = arith.constant dense<0.000000e+00> : vector<32x16xf32>
    %93 = tpu.matmul %90, %92, %cst_31 {dimension_numbers = #tpu.dot_dimension_numbers<[1], [0], [0], [1], [0, 0, 1, 1], [], []>} : vector<32x16xf32>, vector<16x16xf32>, vector<32x16xf32> -> vector<32x16xf32>
    %94 = vector.broadcast %22 : vector<1x16xf32> to vector<32x16xf32>
    %95 = arith.mulf %94, %93 : vector<32x16xf32>
    %96 = arith.addf %89, %95 : vector<32x16xf32>
    %97 = vector.extract_strided_slice %74 {offsets = [96, 0], sizes = [32, 16], strides = [1, 1]} : vector<128x16xf32> to vector<32x16xf32>
    %98 = vector.extract_strided_slice %1 {offsets = [3, 0, 0], sizes = [1, 16, 16], strides = [1, 1, 1]} : vector<4x16x16xf32> to vector<1x16x16xf32>
    %99 = vector.shape_cast %98 : vector<1x16x16xf32> to vector<16x16xf32>
    %cst_32 = arith.constant dense<0.000000e+00> : vector<32x16xf32>
    %100 = tpu.matmul %97, %99, %cst_32 {dimension_numbers = #tpu.dot_dimension_numbers<[1], [0], [0], [1], [0, 0, 1, 1], [], []>} : vector<32x16xf32>, vector<16x16xf32>, vector<32x16xf32> -> vector<32x16xf32>
    %101 = vector.broadcast %29 : vector<1x16xf32> to vector<32x16xf32>
    %102 = arith.mulf %101, %100 : vector<32x16xf32>
    %103 = arith.addf %96, %102 : vector<32x16xf32>
    %cst_33 = arith.constant 5.000000e-01 : f32
    %104 = vector.broadcast %cst_33 : f32 to vector<32x16xf32>
    %105 = arith.mulf %104, %103 : vector<32x16xf32>
    %cst_34 = arith.constant 0.707106769 : f32
    %106 = vector.broadcast %cst_34 : f32 to vector<32x16xf32>
    %107 = arith.mulf %103, %106 : vector<32x16xf32>
    %108 = math.erf %107 : vector<32x16xf32>
    %cst_35 = arith.constant 1.000000e+00 : f32
    %109 = vector.broadcast %cst_35 : f32 to vector<32x16xf32>
    %110 = arith.addf %109, %108 : vector<32x16xf32>
    %111 = arith.mulf %105, %110 : vector<32x16xf32>
    %c0_36 = arith.constant 0 : index
    %c0_37 = arith.constant 0 : index
    %c0_38 = arith.constant 0 : index
    %112 = vector.load %arg4[%c0_36, %c0_37, %c0_38] : memref<1x32x16xf32, #tpu.memory_space<vmem>>, vector<1x32x16xf32>
    %113 = vector.shape_cast %112 : vector<1x32x16xf32> to vector<32x16xf32>
    %114 = vector.shape_cast %111 : vector<32x16xf32> to vector<1x32x16xf32>
    tpu.vector_store %arg4[%c0_36, %c0_37, %c0_38], %114 {strides = array<i32>} : memref<1x32x16xf32, #tpu.memory_space<vmem>>, vector<1x32x16xf32>,
    return
  }
  func.func @transform_0(%arg0: i32) -> (i32, i32, i32) {
    %c0_i32 = arith.constant 0 : i32
    %c0_i32_0 = arith.constant 0 : i32
    %c0_i32_1 = arith.constant 0 : i32
    return %arg0, %c0_i32, %c0_i32_0 : i32, i32, i32
  }
  func.func @transform_1(%arg0: i32) -> (i32, i32, i32) {
    %c0_i32 = arith.constant 0 : i32
    %c0_i32_0 = arith.constant 0 : i32
    %c0_i32_1 = arith.constant 0 : i32
    %c0_i32_2 = arith.constant 0 : i32
    return %c0_i32, %c0_i32_0, %c0_i32_1 : i32, i32, i32
  }
  func.func @transform_2(%arg0: i32) -> (i32, i32, i32, i32) {
    %c0_i32 = arith.constant 0 : i32
    %c0_i32_0 = arith.constant 0 : i32
    %c0_i32_1 = arith.constant 0 : i32
    %c0_i32_2 = arith.constant 0 : i32
    return %arg0, %c0_i32, %c0_i32_0, %c0_i32_1 : i32, i32, i32, i32
  }
  func.func @transform_3(%arg0: i32) -> (i32, i32, i32) {
    %c0_i32 = arith.constant 0 : i32
    %c0_i32_0 = arith.constant 0 : i32
    %c0_i32_1 = arith.constant 0 : i32
    return %arg0, %c0_i32, %c0_i32_0 : i32, i32, i32
  }
}

</mosaic_0001>

<bundles_post_ra>
// kernel: tpu_custom_call.1
= control target key start
LH: loop header
LB: loop body
LE: loop exit
PB: predicated region body
PF: predicated region fallthrough
CT: control target
= control target key end

     0   :  { %s2055_s12 = smov 0   ;;  %s2327_s0 = inlined_call_operand.vmem [shape: f32[2,32,16], index: 0, kind: input, shape index: {}]   ;;  %s2328_s1 = inlined_call_operand.vmem [shape: f32[2,128,32], index: 1, kind: input, shape index: {}]   ;;  %s2329_s2 = inlined_call_operand.vmem [shape: f32[2,4,16,16], index: 2, kind: input, shape index: {}]   ;;  %s2330_s3 = inlined_call_operand.vmem [shape: f32[2,32,16], index: 3, kind: output, shape index: {}]  }
   0x1 LB: > { %s1619_s13 = sadd.s32 4294967295, %s2033_s12   ;;  %p1623_p0 = scmp.ge.s32.totalorder %s2033_s12, 1  ;;  %s2033_s12 = sphi %s2055_s12, %s13_s12  }
   0x2   : > { %p147_p1 = scmp.lt.s32.totalorder %s2033_s12, 3 }
   0x4   : > { %p148_p2 = pnand %p1623_p0, %p147_p1 }
   0x5   : > { %p176_p3 = scmp.lt.s32.totalorder (!%p148_p2), %s1619_s13, 1  ;;  %v248_v0 = vld [vmem:[%s2328_s1] sm:$0xff] (!%p148_p2)  ;;  %vm264_vm0 = vcmask (!%p148_p2), 261120   ;;  %vm199_vm1 = vcmask (!%p148_p2), 130048   ;;  %v249_v13 = vld [vmem:[%s2328_s1 + $0x8] sm:$0xff] (!%p148_p2)  ;;  %v250_v14 = vld [vmem:[%s2328_s1 + $0x10] sm:$0xff] (!%p148_p2) }
   0x6   : > { %151 = sbr.rel (%p148_p2) target bundleno = 986 (0x3da), region = 32  ;;  %1811 = vmatprep.mubr.msk.f32.mxu0 (!%p148_p2), %vm264_vm0, %v248_v0  ;;  %v251_v15 = vld [vmem:[%s2328_s1 + $0x18] sm:$0xff] (!%p148_p2)  ;;  %v252_v16 = vld [vmem:[%s2328_s1 + $0x20] sm:$0xff] (!%p148_p2)  ;;  %v253_v17 = vld [vmem:[%s2328_s1 + $0x28] sm:$0xff] (!%p148_p2) }
   0x7   : > { %v254_v18 = vld [vmem:[%s2328_s1 + $0x30] sm:$0xff] (!%p148_p2)  ;;  %v255_v19 = vld [vmem:[%s2328_s1 + $0x38] sm:$0xff] (!%p148_p2)  ;;  %v256_v20 = vld [vmem:[%s2328_s1 + $0x40] sm:$0xff] (!%p148_p2) }
   0x8   : > { %v257_v21 = vld [vmem:[%s2328_s1 + $0x48] sm:$0xff] (!%p148_p2)  ;;  %v258_v22 = vld [vmem:[%s2328_s1 + $0x50] sm:$0xff] (!%p148_p2)  ;;  %v259_v23 = vld [vmem:[%s2328_s1 + $0x58] sm:$0xff] (!%p148_p2) }
   0x9   : > { %v260_v24 = vld [vmem:[%s2328_s1 + $0x60] sm:$0xff] (!%p148_p2)  ;;  %v261_v25 = vld [vmem:[%s2328_s1 + $0x68] sm:$0xff] (!%p148_p2)  ;;  %v262_v26 = vld [vmem:[%s2328_s1 + $0x70] sm:$0xff] (!%p148_p2) }
   0xa   : > { %v263_v27 = vld [vmem:[%s2328_s1 + $0x78] sm:$0xff] (!%p148_p2)  ;;  %v1662_v62 = vld [vmem:[%s2328_s1 + $0x80] sm:$0xff] (!%p148_p2) }
   0xd   : > { %s2332_s13 = smov (!%p176_p3, %s1619_s13), 1 }
   0xe   : > { %s1712_s16 = sshll.u32 %s2332_s13, 5  ;;  %s1713_s17 = sshll.u32 %s2332_s13, 6 }
   0xf   : > { %s180_s20 = scalar_lea.vmem %s2327_s0, %s1712_s16  ;;  %s2079_s23 = scalar_lea.vmem %s2329_s2, %s1713_s17 }
  0x10   : > { %v244_v1 = vld [vmem:[%s180_s20] sm:$0xff]  ;;  %v245_v2 = vld [vmem:[%s180_s20 + $0x8] sm:$0xff]  ;;  %v246_v3 = vld [vmem:[%s180_s20 + $0x10] sm:$0xff]  ;;  %s190_s15 = scalar_lea.vmem %s2330_s3, %s1712_s16 }
  0x11   : > { %v1947_v4 = vpack.c.bf16 %v245_v2, %v244_v1  ;;  %v247_v5 = vld [vmem:[%s180_s20 + $0x18] sm:$0xff]  ;;  %v191_v6 = vld [vmem:[%s2079_s23] sm:$0xff]  ;;  %v192_v7 = vld [vmem:[%s2079_s23 + $0x8] sm:$0xff] }
  0x12   : > { %v1951_v8 = vpack.c.bf16 %v247_v5, %v246_v3  ;;  %v200_v9 = vsel %vm199_vm1, %v191_v6, 0.0  ;;  %v201_v10 = vsel %vm199_vm1, %v192_v7, 0.0  ;;  %v1955_v11 = vpack.c.bf16 %v192_v7, %v191_v6  ;;  %v193_v28 = vld [vmem:[%s2079_s23 + $0x10] sm:$0xff]  ;;  %v194_v29 = vld [vmem:[%s2079_s23 + $0x18] sm:$0xff]  ;;  %v195_v34 = vld [vmem:[%s2079_s23 + $0x20] sm:$0xff] }
  0x13   : > { %1948 = vmatprep.subr.bf16.mxu0 %v1947_v4  ;;  %v2085_v12 = vadd.f32 %v201_v10, %v200_v9  ;;  %v211_v30 = vsel %vm199_vm1, %v193_v28, 0.0  ;;  %v212_v31 = vsel %vm199_vm1, %v194_v29, 0.0  ;;  %v2151_v32 = vpack.c.bf16 %v194_v29, %v193_v28  ;;  %v196_v35 = vld [vmem:[%s2079_s23 + $0x28] sm:$0xff]  ;;  %v197_v39 = vld [vmem:[%s2079_s23 + $0x30] sm:$0xff]  ;;  %v198_v40 = vld [vmem:[%s2079_s23 + $0x38] sm:$0xff] }
  0x14   : > { %1950 = vmatpush3.bf16.msra.mxu0 %v1947_v4  ;;  %1956 = vmatprep.subr.bf16.mxu1 %v1955_v11  ;;  %v213_v33 = vadd.f32 %v212_v31, %v211_v30  ;;  %v222_v36 = vsel %vm199_vm1, %v195_v34, 0.0  ;;  %v223_v37 = vsel %vm199_vm1, %v196_v35, 0.0  ;;  %v233_v41 = vsel %vm199_vm1, %v197_v39, 0.0 }
  0x15   : > { %1952 = vmatprep.subr.bf16.mxu0 %v1951_v8  ;;  %1958 = vmatpush3.bf16.msra.mxu1 %v1955_v11  ;;  %v224_v38 = vadd.f32 %v223_v37, %v222_v36  ;;  %v234_v42 = vsel %vm199_vm1, %v198_v40, 0.0  ;;  %v2163_v46 = vpack.c.bf16 %v196_v35, %v195_v34  ;;  %v2171_v51 = vpack.c.bf16 %v198_v40, %v197_v39 }
  0x16   : > { %1960 = vmatprep.subr.bf16.mxu1 %v2151_v32  ;;  %v235_v43 = vadd.f32 %v234_v42, %v233_v41  ;;  %v203_v63 = vrot.slane %v2085_v12, 4  ;;  %v214_v0 = vrot.slane %v213_v33, 4 }
  0x17   : > { %v225_v5 = vrot.slane %v224_v38, 4 }
  0x18   : > { %1954 = vmatpush3.bf16.msra.mxu0 %v1951_v8  ;;  %v204_v1 = vadd.f32 %v203_v63, %v2085_v12  ;;  %v215_v2 = vadd.f32 %v214_v0, %v213_v33 }
  0x19   : > { %1980 = vmatprep.subr.bf16.mxu0 %v1955_v11  ;;  %v226_v8 = vadd.f32 %v225_v5, %v224_v38 }
  0x1a   : > { %v205_v3 = vrot.slane %v204_v1, 2  ;;  %v216_v4 = vrot.slane %v215_v2, 2 }
  0x1b   : > { %1812 = vmatmul.mubr.msk.f32.vlgmr.msra.gmra.mrb[0].mxu0 %vm264_vm0, %v249_v13  ;;  %v236_v13 = vrot.slane %v235_v43, 4 }
  0x1c   : > { %1814 = vmatprep.mubr.msk.f32.mxu0 %vm264_vm0, %v250_v14  ;;  %1982 = vmatpush3.bf16.msra.mxu0 %v1955_v11  ;;  %v206_v6 = vadd.f32 %v205_v3, %v204_v1  ;;  %v217_v7 = vadd.f32 %v216_v4, %v215_v2  ;;  %v227_v11 = vrot.slane %v226_v8, 2 }
  0x1d   : > { %1984 = vmatprep.subr.bf16.mxu0 %v2151_v32 }
  0x1e   : > { %v207_v9 = vrot.slane %v206_v6, 1  ;;  %v218_v10 = vrot.slane %v217_v7, 1 }
  0x1f   : > { %1815 = vmatmul.mubr.msk.f32.gmra.mrb[2].mxu0 %vm264_vm0, %v251_v15 }
  0x20   : > { %1817 = vmatprep.mubr.msk.f32.mxu0 %vm264_vm0, %v252_v16  ;;  %v208_v14 = vadd.f32 %v207_v9, %v206_v6  ;;  %v219_v15 = vadd.f32 %v218_v10, %v217_v7  ;;  %v228_v16 = vadd.f32 %v227_v11, %v226_v8 }
  0x23   : > { %1818 = vmatmul.mubr.msk.f32.gmra.mrb[4].mxu0 %vm264_vm0, %v253_v17  ;;  %v237_v17 = vadd.f32 %v236_v13, %v235_v43 }
  0x24   : > { %1820 = vmatprep.mubr.msk.f32.mxu0 %vm264_vm0, %v254_v18  ;;  %v209_v18 = vmax.f32 %v208_v14, 1.0 }
  0x26   : > { %2003 = vrcp.f32 %v209_v18 }
  0x27   : > { %1821 = vmatmul.mubr.msk.f32.gmra.mrb[6].mxu0 %vm264_vm0, %v255_v19  ;;  %v220_v19 = vmax.f32 %v219_v15, 1.0 }
  0x28   : > { %1823 = vmatprep.mubr.msk.f32.mxu0 %vm264_vm0, %v256_v20  ;;  %v229_v20 = vrot.slane %v228_v16, 1 }
  0x29   : > { %2005 = vrcp.f32 %v220_v19 }
  0x2a   : > { %v230_v12 = vadd.f32 %v229_v20, %v228_v16 }
  0x2b   : > { %1824 = vmatmul.mubr.msk.f32.gmra.mrb[8].mxu0 %vm264_vm0, %v257_v21  ;;  %v238_v21 = vrot.slane %v237_v17, 2 }
  0x2c   : > { %1826 = vmatprep.mubr.msk.f32.mxu0 %vm264_vm0, %v258_v22 }
  0x2d   : > { %v239_v22 = vadd.f32 %v238_v21, %v237_v17 }
  0x2f   : > { %1827 = vmatmul.mubr.msk.f32.gmra.mrb[10].mxu0 %vm264_vm0, %v259_v23  ;;  %v231_v23 = vmax.f32 %v230_v12, 1.0 }
  0x30   : > { %1829 = vmatprep.mubr.msk.f32.mxu0 %vm264_vm0, %v260_v24  ;;  %v240_v24 = vrot.slane %v239_v22, 1  ;;  %v2194_v29 = vpop.eup %2003 }
  0x31   : > { %2007 = vrcp.f32 %v231_v23 }
  0x33   : > { %1830 = vmatmul.mubr.msk.f32.gmra.mrb[12].mxu0 %vm264_vm0, %v261_v25  ;;  %v2196_v31 = vpop.eup %2005 }
  0x34   : > { %1832 = vmatprep.mubr.msk.f32.mxu0 %vm264_vm0, %v262_v26 }
  0x37   : > { %1833 = vmatmul.mubr.msk.f32.gmra.mrb[14].mxu0 %vm264_vm0, %v263_v27  ;;  %v241_v27 = vadd.f32 %v240_v24, %v239_v22 }
  0x39   : > { %v242_v33 = vmax.f32 %v241_v27, 1.0 }
  0x3b   : > { %2009 = vrcp.f32 %v242_v33 }
  0xee   : > { %v1813_v44 = vpop.f32.mrb[0].mxu0 }
  0xef   : > { %v379_v45 = vpop.f32.mrb[1].mxu0 }
  0xf0   : > { %1839 = vmatprep.mubr.msk.f32.mxu1 %vm199_vm1, %v379_v45 }
  0xf1   : > { %1840 = vmatmul.mubr.msk.f32.vlgmr.msra.gmra.mrb[0].mxu1 %vm199_vm1, %v1813_v44 }
  0xf2   : > { %v1816_v47 = vpop.f32.mrb[2].mxu0  ;;  %1962 = vmatpush3.bf16.msra.mxu1 %v2151_v32 }
  0xf3   : > { %v389_v48 = vpop.f32.mrb[3].mxu0  ;;  %1964 = vmatprep.subr.bf16.mxu1 %v2163_v46 }
  0xf4   : > { %1842 = vmatprep.mubr.msk.f32.mxu1 %vm199_vm1, %v389_v48 }
  0xf5   : > { %1843 = vmatmul.mubr.msk.f32.gmra.mrb[2].mxu1 %vm199_vm1, %v1816_v47  ;;  %v2204_v47 = vpop.eup %2007 }
  0xf6   : > { %v1819_v49 = vpop.f32.mrb[4].mxu0 }
  0xf7   : > { %v399_v50 = vpop.f32.mrb[5].mxu0 }
  0xf8   : > { %1849 = vmatprep.mubr.msk.f32.mxu1 %vm199_vm1, %v399_v50 }
  0xf9   : > { %1850 = vmatmul.mubr.msk.f32.vlgmr.msra.gmra.mrb[4].mxu1 %vm199_vm1, %v1819_v49 }
  0xfa   : > { %v1822_v52 = vpop.f32.mrb[6].mxu0  ;;  %1966 = vmatpush3.bf16.msra.mxu1 %v2163_v46 }
  0xfb   : > { %v409_v53 = vpop.f32.mrb[7].mxu0  ;;  %1968 = vmatprep.subr.bf16.mxu1 %v2171_v51 }
  0xfc   : > { %1852 = vmatprep.mubr.msk.f32.mxu1 %vm199_vm1, %v409_v53 }
  0xfd   : > { %1853 = vmatmul.mubr.msk.f32.gmra.mrb[6].mxu1 %vm199_vm1, %v1822_v52 }
  0xfe   : > { %v1825_v54 = vpop.f32.mrb[8].mxu0 }
  0xff   : > { %v419_v55 = vpop.f32.mrb[9].mxu0 }
 0x100   : > { %1859 = vmatprep.mubr.msk.f32.mxu1 %vm199_vm1, %v419_v55 }
 0x101   : > { %1860 = vmatmul.mubr.msk.f32.vlgmr.msra.gmra.mrb[8].mxu1 %vm199_vm1, %v1825_v54 }
 0x102   : > { %v1828_v56 = vpop.f32.mrb[10].mxu0  ;;  %1970 = vmatpush3.bf16.msra.mxu1 %v2171_v51 }
 0x103   : > { %v429_v57 = vpop.f32.mrb[11].mxu0 }
 0x104   : > { %1862 = vmatprep.mubr.msk.f32.mxu1 %vm199_vm1, %v429_v57 }
 0x105   : > { %1863 = vmatmul.mubr.msk.f32.gmra.mrb[10].mxu1 %vm199_vm1, %v1828_v56 }
 0x106   : > { %v1831_v58 = vpop.f32.mrb[12].mxu0 }
 0x107   : > { %v439_v59 = vpop.f32.mrb[13].mxu0 }
 0x108   : > { %1869 = vmatprep.mubr.msk.f32.mxu1 %vm199_vm1, %v439_v59 }
 0x109   : > { %1870 = vmatmul.mubr.msk.f32.vlgmr.msra.gmra.mrb[12].mxu1 %vm199_vm1, %v1831_v58 }
 0x10a   : > { %v1834_v60 = vpop.f32.mrb[14].mxu0 }
 0x10b   : > { %v449_v61 = vpop.f32.mrb[15].mxu0 }
 0x10c   : > { %1872 = vmatprep.mubr.msk.f32.mxu1 %vm199_vm1, %v449_v61 }
 0x10d   : > { %1873 = vmatmul.mubr.msk.f32.gmra.mrb[14].mxu1 %vm199_vm1, %v1834_v60 }
 0x10e   : > { %1883 = vmatprep.mubr.msk.f32.mxu1 %vm264_vm0, %v1662_v62  ;;  %v2211_v62 = vpop.eup %2009 }
 0x1c4   : > { %v1841_v25 = vpop.f32.mrb[0].mxu1 }
 0x1c5   : > { %v536_v26 = vpop.f32.mrb[1].mxu1  ;;  %v556_v35 = vmul.f32 %v2194_v29, %v1841_v25 }
 0x1c6   : > { %v555_v38 = vmul.f32 %v2194_v29, %v536_v26 }
 0x1c8   : > { %v1844_v28 = vpop.f32.mrb[2].mxu1 }
 0x1c9   : > { %v546_v30 = vpop.f32.mrb[3].mxu1  ;;  %v558_v43 = vmul.f32 %v2194_v29, %v1844_v28 }
 0x1ca   : > { %v557_v48 = vmul.f32 %v2194_v29, %v546_v30 }
 0x1cc   : > { %v1851_v34 = vpop.f32.mrb[4].mxu1 }
 0x1cd   : > { %v661_v36 = vmul.f32 %v2196_v31, %v1851_v34  ;;  %v641_v37 = vpop.f32.mrb[5].mxu1 }
 0x1ce   : > { %v660_v39 = vmul.f32 %v2196_v31, %v641_v37 }
 0x1cf   : > { %v665_v40 = vadd.f32 %v661_v36, %v556_v35 }
 0x1d0   : > { %v664_v41 = vadd.f32 %v660_v39, %v555_v38  ;;  %v1854_v42 = vpop.f32.mrb[6].mxu1  ;;  %v1663_v39 = vld [vmem:[%s2328_s1 + $0x88] sm:$0xff] }
 0x1d1   : > { %v663_v44 = vmul.f32 %v2196_v31, %v1854_v42  ;;  %v651_v45 = vpop.f32.mrb[7].mxu1  ;;  %v1666_v42 = vld [vmem:[%s2328_s1 + $0xa0] sm:$0xff] }
 0x1d2   : > { %v662_v49 = vmul.f32 %v2196_v31, %v651_v45  ;;  %v1669_v45 = vld [vmem:[%s2328_s1 + $0xb8] sm:$0xff] }
 0x1d3   : > { %v667_v50 = vadd.f32 %v663_v44, %v558_v43  ;;  %v1667_v43 = vld [vmem:[%s2328_s1 + $0xa8] sm:$0xff]  ;;  %v1668_v44 = vld [vmem:[%s2328_s1 + $0xb0] sm:$0xff] }
 0x1d4   : > { %v666_v52 = vadd.f32 %v662_v49, %v557_v48  ;;  %v1861_v53 = vpop.f32.mrb[8].mxu1  ;;  %v1670_v48 = vld [vmem:[%s2328_s1 + $0xc0] sm:$0xff]  ;;  %v1671_v49 = vld [vmem:[%s2328_s1 + $0xc8] sm:$0xff] }
 0x1d5   : > { %v766_v54 = vmul.f32 %v2204_v47, %v1861_v53  ;;  %v746_v55 = vpop.f32.mrb[9].mxu1  ;;  %v1674_v53 = vld [vmem:[%s2328_s1 + $0xe0] sm:$0xff] }
 0x1d6   : > { %v765_v56 = vmul.f32 %v2204_v47, %v746_v55  ;;  %v1676_v55 = vld [vmem:[%s2328_s1 + $0xf0] sm:$0xff] }
 0x1d7   : > { %v770_v57 = vadd.f32 %v766_v54, %v665_v40  ;;  %v1664_v40 = vld [vmem:[%s2328_s1 + $0x90] sm:$0xff]  ;;  %v1675_v54 = vld [vmem:[%s2328_s1 + $0xe8] sm:$0xff] }
 0x1d8   : > { %v769_v58 = vadd.f32 %v765_v56, %v664_v41  ;;  %v1864_v59 = vpop.f32.mrb[10].mxu1  ;;  %v1665_v41 = vld [vmem:[%s2328_s1 + $0x98] sm:$0xff] }
 0x1d9   : > { %v768_v60 = vmul.f32 %v2204_v47, %v1864_v59  ;;  %v756_v61 = vpop.f32.mrb[11].mxu1  ;;  %v1677_v56 = vld [vmem:[%s2328_s1 + $0xf8] sm:$0xff] }
 0x1da   : > { %v767_v63 = vmul.f32 %v2204_v47, %v756_v61 }
 0x1db   : > { %v772_v0 = vadd.f32 %v768_v60, %v667_v50  ;;  %v1672_v50 = vld [vmem:[%s2328_s1 + $0xd0] sm:$0xff] }
 0x1dc   : > { %v771_v1 = vadd.f32 %v767_v63, %v666_v52  ;;  %v1871_v2 = vpop.f32.mrb[12].mxu1  ;;  %v1673_v52 = vld [vmem:[%s2328_s1 + $0xd8] sm:$0xff] }
 0x1dd   : > { %v871_v3 = vmul.f32 %v2211_v62, %v1871_v2  ;;  %v851_v4 = vpop.f32.mrb[13].mxu1 }
 0x1de   : > { %v870_v5 = vmul.f32 %v2211_v62, %v851_v4 }
 0x1df   : > { %v875_v6 = vadd.f32 %v871_v3, %v770_v57 }
 0x1e0   : > { %v874_v7 = vadd.f32 %v870_v5, %v769_v58  ;;  %v1874_v8 = vpop.f32.mrb[14].mxu1 }
 0x1e1   : > { %v883_v9 = vmul.f32 0.70710677, %v875_v6  ;;  %v873_v10 = vmul.f32 %v2211_v62, %v1874_v8  ;;  %v861_v11 = vpop.f32.mrb[15].mxu1  ;;  %v879_v21 = vmul.f32 0.5, %v875_v6 }
 0x1e2   : > { %v882_v13 = vmul.f32 0.70710677, %v874_v7  ;;  %v872_v14 = vmul.f32 %v2211_v62, %v861_v11  ;;  %v878_v22 = vmul.f32 0.5, %v874_v7 }
 0x1e3   : > { %2011 = verf.f32 %v883_v9  ;;  %v877_v15 = vadd.f32 %v873_v10, %v772_v0 }
 0x1e4   : > { %2013 = verf.f32 %v882_v13  ;;  %v876_v16 = vadd.f32 %v872_v14, %v771_v1 }
 0x1e5   : > { %v885_v17 = vmul.f32 0.70710677, %v877_v15  ;;  %v881_v28 = vmul.f32 0.5, %v877_v15 }
 0x1e6   : > { %v884_v18 = vmul.f32 0.70710677, %v876_v16  ;;  %v880_v33 = vmul.f32 0.5, %v876_v16 }
 0x1e7   : > { %2015 = verf.f32 %v885_v17 }
 0x1e8   : > { %2017 = verf.f32 %v884_v18 }
 0x1ed   : > { %v2012_v19 = vpop.eup %2011 }
 0x1ee   : > { %v2014_v20 = vpop.eup %2013  ;;  %v891_v12 = vadd.f32 1.0, %v2012_v19 }
 0x1ef   : > { %v890_v23 = vadd.f32 1.0, %v2014_v20 }
 0x1f0   : > { %v895_v24 = vmul.f32 %v891_v12, %v879_v21 }
 0x1f1   : > { %v2016_v25 = vpop.eup %2015  ;;  %v894_v26 = vmul.f32 %v890_v23, %v878_v22 }
 0x1f2   : > { %v2018_v27 = vpop.eup %2017  ;;  %v893_v30 = vadd.f32 1.0, %v2016_v25 }
 0x1f3   : > { %v892_v34 = vadd.f32 1.0, %v2018_v27  ;;  %v1971_v35 = vpack.c.bf16 %v895_v24, %v894_v26 }
 0x1f4   : > { %v897_v36 = vmul.f32 %v893_v30, %v881_v28 }
 0x1f5   : > { %1972 = vmatprep.subr.bf16.mxu1 %v1971_v35  ;;  %v896_v37 = vmul.f32 %v892_v34, %v880_v33 }
 0x1f6   : > { %1974 = vmatpush3.bf16.msra.mxu1 %v1971_v35 }
 0x1f7   : > { %v1975_v38 = vpack.c.bf16 %v897_v36, %v896_v37 }
 0x1f9   : > { %1976 = vmatprep.subr.bf16.mxu1 %v1975_v38 }
 0x1fa   : > { %1978 = vmatpush3.bf16.msra.mxu1 %v1975_v38 }
 0x1fd   : > { %1884 = vmatmul.mubr.msk.f32.vlgmr.msra.gmra.mrb[16].mxu1 %vm264_vm0, %v1663_v39 }
 0x1fe   : > { %1886 = vmatprep.mubr.msk.f32.mxu1 %vm264_vm0, %v1664_v40 }
 0x201   : > { %1887 = vmatmul.mubr.msk.f32.gmra.mrb[18].mxu1 %vm264_vm0, %v1665_v41 }
 0x202   : > { %1889 = vmatprep.mubr.msk.f32.mxu1 %vm264_vm0, %v1666_v42 }
 0x205   : > { %1890 = vmatmul.mubr.msk.f32.gmra.mrb[20].mxu1 %vm264_vm0, %v1667_v43 }
 0x206   : > { %1892 = vmatprep.mubr.msk.f32.mxu1 %vm264_vm0, %v1668_v44 }
 0x209   : > { %1893 = vmatmul.mubr.msk.f32.gmra.mrb[22].mxu1 %vm264_vm0, %v1669_v45 }
 0x20a   : > { %1895 = vmatprep.mubr.msk.f32.mxu1 %vm264_vm0, %v1670_v48 }
 0x20d   : > { %1896 = vmatmul.mubr.msk.f32.gmra.mrb[24].mxu1 %vm264_vm0, %v1671_v49 }
 0x20e   : > { %1898 = vmatprep.mubr.msk.f32.mxu1 %vm264_vm0, %v1672_v50 }
 0x211   : > { %1899 = vmatmul.mubr.msk.f32.gmra.mrb[26].mxu1 %vm264_vm0, %v1673_v52 }
 0x212   : > { %1901 = vmatprep.mubr.msk.f32.mxu1 %vm264_vm0, %v1674_v53 }
 0x215   : > { %1902 = vmatmul.mubr.msk.f32.gmra.mrb[28].mxu1 %vm264_vm0, %v1675_v54 }
 0x216   : > { %1904 = vmatprep.mubr.msk.f32.mxu1 %vm264_vm0, %v1676_v55 }
 0x219   : > { %1905 = vmatmul.mubr.msk.f32.gmra.mrb[30].mxu1 %vm264_vm0, %v1677_v56 }
 0x2d0   : > { %v1885_v57 = vpop.f32.mrb[16].mxu1 }
 0x2d1   : > { %v1029_v58 = vpop.f32.mrb[17].mxu1 }
 0x2d2   : > { %1911 = vmatprep.mubr.msk.f32.mxu0 %vm199_vm1, %v1029_v58 }
 0x2d3   : > { %1912 = vmatmul.mubr.msk.f32.vlgmr.msra.gmra.mrb[16].mxu0 %vm199_vm1, %v1885_v57 }
 0x2d4   : > { %v1888_v59 = vpop.f32.mrb[18].mxu1  ;;  %1986 = vmatpush3.bf16.msra.mxu0 %v2151_v32 }
 0x2d5   : > { %v1039_v60 = vpop.f32.mrb[19].mxu1  ;;  %1988 = vmatprep.subr.bf16.mxu0 %v2163_v46 }
 0x2d6   : > { %1914 = vmatprep.mubr.msk.f32.mxu0 %vm199_vm1, %v1039_v60 }
 0x2d7   : > { %1915 = vmatmul.mubr.msk.f32.gmra.mrb[18].mxu0 %vm199_vm1, %v1888_v59 }
 0x2d8   : > { %v1891_v61 = vpop.f32.mrb[20].mxu1 }
 0x2d9   : > { %v1049_v63 = vpop.f32.mrb[21].mxu1 }
 0x2da   : > { %1921 = vmatprep.mubr.msk.f32.mxu0 %vm199_vm1, %v1049_v63 }
 0x2db   : > { %1922 = vmatmul.mubr.msk.f32.vlgmr.msra.gmra.mrb[20].mxu0 %vm199_vm1, %v1891_v61 }
 0x2dc   : > { %v1894_v0 = vpop.f32.mrb[22].mxu1  ;;  %1990 = vmatpush3.bf16.msra.mxu0 %v2163_v46 }
 0x2dd   : > { %v1059_v1 = vpop.f32.mrb[23].mxu1  ;;  %1992 = vmatprep.subr.bf16.mxu0 %v2171_v51 }
 0x2de   : > { %1924 = vmatprep.mubr.msk.f32.mxu0 %vm199_vm1, %v1059_v1 }
 0x2df   : > { %1925 = vmatmul.mubr.msk.f32.gmra.mrb[22].mxu0 %vm199_vm1, %v1894_v0 }
 0x2e0   : > { %v1897_v32 = vpop.f32.mrb[24].mxu1 }
 0x2e1   : > { %v1069_v2 = vpop.f32.mrb[25].mxu1 }
 0x2e2   : > { %1931 = vmatprep.mubr.msk.f32.mxu0 %vm199_vm1, %v1069_v2 }
 0x2e3   : > { %1932 = vmatmul.mubr.msk.f32.vlgmr.msra.gmra.mrb[24].mxu0 %vm199_vm1, %v1897_v32 }
 0x2e4   : > { %v1900_v3 = vpop.f32.mrb[26].mxu1  ;;  %1994 = vmatpush3.bf16.msra.mxu0 %v2171_v51 }
 0x2e5   : > { %v1079_v4 = vpop.f32.mrb[27].mxu1 }
 0x2e6   : > { %1934 = vmatprep.mubr.msk.f32.mxu0 %vm199_vm1, %v1079_v4 }
 0x2e7   : > { %1935 = vmatmul.mubr.msk.f32.gmra.mrb[26].mxu0 %vm199_vm1, %v1900_v3 }
 0x2e8   : > { %v1903_v46 = vpop.f32.mrb[28].mxu1 }
 0x2e9   : > { %v1089_v5 = vpop.f32.mrb[29].mxu1 }
 0x2ea   : > { %1941 = vmatprep.mubr.msk.f32.mxu0 %vm199_vm1, %v1089_v5 }
 0x2eb   : > { %1942 = vmatmul.mubr.msk.f32.vlgmr.msra.gmra.mrb[28].mxu0 %vm199_vm1, %v1903_v46 }
 0x2ec   : > { %v1906_v6 = vpop.f32.mrb[30].mxu1 }
 0x2ed   : > { %v1099_v7 = vpop.f32.mrb[31].mxu1 }
 0x2ee   : > { %1944 = vmatprep.mubr.msk.f32.mxu0 %vm199_vm1, %v1099_v7 }
 0x2ef   : > { %1945 = vmatmul.mubr.msk.f32.gmra.mrb[30].mxu0 %vm199_vm1, %v1906_v6 }
 0x3a6   : > { %v1913_v8 = vpop.f32.mrb[16].mxu0 }
 0x3a7   : > { %v1186_v9 = vpop.f32.mrb[17].mxu0  ;;  %v1206_v13 = vmul.f32 %v2194_v29, %v1913_v8 }
 0x3a8   : > { %v1205_v16 = vmul.f32 %v2194_v29, %v1186_v9 }
 0x3aa   : > { %v1916_v51 = vpop.f32.mrb[18].mxu0 }
 0x3ab   : > { %v1196_v10 = vpop.f32.mrb[19].mxu0  ;;  %v1208_v21 = vmul.f32 %v2194_v29, %v1916_v51 }
 0x3ac   : > { %v1207_v23 = vmul.f32 %v2194_v29, %v1196_v10 }
 0x3ae   : > { %v1923_v11 = vpop.f32.mrb[20].mxu0 }
 0x3af   : > { %v1311_v14 = vmul.f32 %v2196_v31, %v1923_v11  ;;  %v1291_v15 = vpop.f32.mrb[21].mxu0 }
 0x3b0   : > { %v1310_v17 = vmul.f32 %v2196_v31, %v1291_v15 }
 0x3b1   : > { %v1315_v18 = vadd.f32 %v1311_v14, %v1206_v13 }
 0x3b2   : > { %v1314_v19 = vadd.f32 %v1310_v17, %v1205_v16  ;;  %v1926_v20 = vpop.f32.mrb[22].mxu0 }
 0x3b3   : > { %v1313_v12 = vmul.f32 %v2196_v31, %v1926_v20  ;;  %v1301_v22 = vpop.f32.mrb[23].mxu0 }
 0x3b4   : > { %v1312_v24 = vmul.f32 %v2196_v31, %v1301_v22 }
 0x3b5   : > { %v1317_v25 = vadd.f32 %v1313_v12, %v1208_v21 }
 0x3b6   : > { %v1316_v26 = vadd.f32 %v1312_v24, %v1207_v23  ;;  %v1933_v27 = vpop.f32.mrb[24].mxu0 }
 0x3b7   : > { %v1416_v28 = vmul.f32 %v2204_v47, %v1933_v27  ;;  %v1396_v30 = vpop.f32.mrb[25].mxu0 }
 0x3b8   : > { %v1415_v33 = vmul.f32 %v2204_v47, %v1396_v30 }
 0x3b9   : > { %v1420_v34 = vadd.f32 %v1416_v28, %v1315_v18 }
 0x3ba   : > { %v1419_v35 = vadd.f32 %v1415_v33, %v1314_v19  ;;  %v1936_v36 = vpop.f32.mrb[26].mxu0 }
 0x3bb   : > { %v1418_v37 = vmul.f32 %v2204_v47, %v1936_v36  ;;  %v1406_v38 = vpop.f32.mrb[27].mxu0 }
 0x3bc   : > { %v1417_v39 = vmul.f32 %v2204_v47, %v1406_v38 }
 0x3bd   : > { %v1422_v40 = vadd.f32 %v1418_v37, %v1317_v25 }
 0x3be   : > { %v1421_v29 = vadd.f32 %v1417_v39, %v1316_v26  ;;  %v1943_v41 = vpop.f32.mrb[28].mxu0 }
 0x3bf   : > { %v1521_v31 = vmul.f32 %v2211_v62, %v1943_v41  ;;  %v1501_v42 = vpop.f32.mrb[29].mxu0 }
 0x3c0   : > { %v1520_v43 = vmul.f32 %v2211_v62, %v1501_v42 }
 0x3c1   : > { %v1525_v44 = vadd.f32 %v1521_v31, %v1420_v34 }
 0x3c2   : > { %v1524_v45 = vadd.f32 %v1520_v43, %v1419_v35  ;;  %v1946_v48 = vpop.f32.mrb[30].mxu0 }
 0x3c3   : > { %v1533_v49 = vmul.f32 0.70710677, %v1525_v44  ;;  %v1523_v50 = vmul.f32 %v2211_v62, %v1946_v48  ;;  %v1511_v52 = vpop.f32.mrb[31].mxu0  ;;  %v1529_v60 = vmul.f32 0.5, %v1525_v44 }
 0x3c4   : > { %v1532_v53 = vmul.f32 0.70710677, %v1524_v45  ;;  %v1522_v54 = vmul.f32 %v2211_v62, %v1511_v52  ;;  %v1528_v63 = vmul.f32 0.5, %v1524_v45 }
 0x3c5   : > { %2019 = verf.f32 %v1533_v49  ;;  %v1527_v47 = vadd.f32 %v1523_v50, %v1422_v40 }
 0x3c6   : > { %2021 = verf.f32 %v1532_v53  ;;  %v1526_v55 = vadd.f32 %v1522_v54, %v1421_v29 }
 0x3c7   : > { %v1535_v56 = vmul.f32 0.70710677, %v1527_v47  ;;  %v1531_v3 = vmul.f32 0.5, %v1527_v47 }
 0x3c8   : > { %v1534_v57 = vmul.f32 0.70710677, %v1526_v55  ;;  %v1530_v46 = vmul.f32 0.5, %v1526_v55 }
 0x3c9   : > { %2023 = verf.f32 %v1535_v56 }
 0x3ca   : > { %2025 = verf.f32 %v1534_v57 }
 0x3cf   : > { %v2020_v58 = vpop.eup %2019 }
 0x3d0   : > { %v2022_v59 = vpop.eup %2021  ;;  %v1541_v61 = vadd.f32 1.0, %v2020_v58 }
 0x3d1   : > { %v1540_v0 = vadd.f32 1.0, %v2022_v59 }
 0x3d2   : > { %v1545_v62 = vmul.f32 %v1541_v61, %v1529_v60 }
 0x3d3   : > { %v2024_v1 = vpop.eup %2023  ;;  %v1544_v32 = vmul.f32 %v1540_v0, %v1528_v63 }
 0x3d4   : > { %v2026_v2 = vpop.eup %2025  ;;  %1549 = vst.msk [vmem:[%s190_s15 + $0x8] sm:$0xff] %vm199_vm1, %v1545_v62  ;;  %v1543_v4 = vadd.f32 1.0, %v2024_v1 }
 0x3d5   : > { %1548 = vst.msk [vmem:[%s190_s15] sm:$0xff] %vm199_vm1, %v1544_v32  ;;  %v1542_v5 = vadd.f32 1.0, %v2026_v2 }
 0x3d6   : > { %v1547_v6 = vmul.f32 %v1543_v4, %v1531_v3 }
 0x3d7   : > { %v1546_v7 = vmul.f32 %v1542_v5, %v1530_v46 }
 0x3d8   : > { %1551 = vst.msk [vmem:[%s190_s15 + $0x18] sm:$0xff] %vm199_vm1, %v1547_v6 }
 0x3d9   : > { %1550 = vst.msk [vmem:[%s190_s15 + $0x10] sm:$0xff] %vm199_vm1, %v1546_v7 }
 0x3da PF: > { %s13_s12 = sadd.s32 1, %s2033_s12  }
 0x3db   : > { %p10_p4 = scmp.ge.s32.totalorder %s13_s12, 4  }
 0x3dd   :  { %12 = sbr.rel (!%p10_p4) target bundleno = 1 (0x1), region = 66 }

</bundles_post_ra>
